<compile_context>
chip_gen: v7x
topology: tpu7x:2x2x1
jax: 0.10.0
libtpu: 0.0.40
codegen_flags: <defaults>
</compile_context>

<pallas_src>
import jax
import jax.numpy as jnp
from jax.experimental import pallas as pl
from jax.experimental.pallas import tpu as pltpu


def mine_kernel(xy_ref, w12_ref, b12_ref, w3t_ref, b3_ref, o_ref):
    xy = xy_ref[...]                      # (TB, K2)   K2 = 2*input_size (tiny)
    tb, k2 = xy.shape
    hidden = w12_ref.shape[1]

    # ---- fused fc1+fc2: K2-step VPU broadcast-MAC (skip MXU for tiny K) ----
    h = jnp.broadcast_to(b12_ref[...], (tb, hidden))      # (TB, H)
    for k in range(k2):                                    # unrolled, K2 == 4
        h = h + xy[:, k:k + 1] * w12_ref[k:k + 1, :]
    h = jnp.maximum(h, 0.0)                                # ReLU

    # ---- fc3 (N=1): elementwise multiply + lane reduction (XLU), no MXU ----
    out = jnp.sum(h * w3t_ref[...], axis=-1, keepdims=True) + b3_ref[...]
    o_ref[...] = out.astype(o_ref.dtype)


def mine_forward(x, y, params, *, block_b=512):
    """Pallas forward for Mine. x, y: (B, input_size) float32."""
    w1, b1, w2, b2, w3, b3 = params
    B, in_size = x.shape
    hidden = w1.shape[1]

    # Fuse layer 1: concat inputs, stack weights, pre-sum biases (exact math).
    xy = jnp.concatenate([x, y], axis=-1)                  # (B, 2*in)
    w12 = jnp.concatenate([w1, w2], axis=0)                # (2*in, H)
    b12 = (b1 + b2).reshape(1, hidden)                     # (1, H)
    w3t = w3.reshape(1, hidden)                            # (1, H)  (= w3.T)
    b3r = b3.reshape(1, 1)                                 # (1, 1)

    k2 = 2 * in_size
    tb = B if B <= block_b else block_b                    # batch tile
    grid = (pl.cdiv(B, tb),)

    return pl.pallas_call(
        mine_kernel,
        out_shape=jax.ShapeDtypeStruct((B, 1), jnp.float32),
        grid=grid,
        in_specs=[
            pl.BlockSpec((tb, k2), lambda i: (i, 0)),        # xy   : tiled on B
            pl.BlockSpec((k2, hidden), lambda i: (0, 0)),    # w12  : resident
            pl.BlockSpec((1, hidden), lambda i: (0, 0)),     # b12  : resident
            pl.BlockSpec((1, hidden), lambda i: (0, 0)),     # w3^T : resident
            pl.BlockSpec((1, 1), lambda i: (0, 0)),          # b3   : resident
        ],
        out_specs=pl.BlockSpec((tb, 1), lambda i: (i, 0)),
        compiler_params=pltpu.CompilerParams(
            dimension_semantics=("parallel",)),
    )(xy, w12, b12, w3t, b3r)


def init_params(key, input_size, hidden_size):
    """Matches the PyTorch module's init: weights ~ N(0, 0.02), biases = 0.
    Weights are returned pre-transposed to (in_features, out_features)."""
    k1, k2, k3 = jax.random.split(key, 3)
    w1 = 0.02 * jax.random.normal(k1, (input_size, hidden_size), jnp.float32)
    w2 = 0.02 * jax.random.normal(k2, (input_size, hidden_size), jnp.float32)
    w3 = 0.02 * jax.random.normal(k3, (hidden_size, 1), jnp.float32)
    b1 = jnp.zeros((1, hidden_size), jnp.float32)
    b2 = jnp.zeros((1, hidden_size), jnp.float32)
    b3 = jnp.zeros((1, 1), jnp.float32)
    return (w1, b1, w2, b2, w3, b3)


def mine_reference(x, y, params):
    w1, b1, w2, b2, w3, b3 = params
    h = jax.nn.relu(x @ w1 + b1 + y @ w2 + b2)
    return h @ w3 + b3


if __name__ == "__main__":
    key = jax.random.PRNGKey(0)
    kp, kx, ky = jax.random.split(key, 3)

    batch = 8
    input_size = 2
    hidden_size = 32

    params = init_params(kp, input_size, hidden_size)
    x = jax.random.normal(kx, (batch, input_size), jnp.float32)
    y = jax.random.normal(ky, (batch, input_size), jnp.float32)

    out = mine_forward(x, y, params)
    out = jax.block_until_ready(out)

    ref = mine_reference(x, y, params)
    assert out.shape == (batch, 1), out.shape
    assert jnp.allclose(out, ref, atol=1e-5, rtol=1e-5), (out, ref)

    print("KERNEL_OK")
</pallas_src>

<mosaic_0001>
module attributes {stable_mosaic.version = 11 : i64} {
  func.func @mine_kernel(%arg0: i32, %arg1: memref<8x4xf32, #tpu.memory_space<vmem>>, %arg2: memref<4x32xf32, #tpu.memory_space<vmem>>, %arg3: memref<1x32xf32, #tpu.memory_space<vmem>>, %arg4: memref<1x32xf32, #tpu.memory_space<vmem>>, %arg5: memref<1x1xf32, #tpu.memory_space<vmem>>, %arg6: memref<8x1xf32, #tpu.memory_space<vmem>>) attributes {dimension_semantics = [#tpu.dimension_semantics<parallel>], iteration_bounds = array<i64: 1>, scalar_prefetch = 0 : i64, scratch_operands = 0 : i64, tpu.core_type = #tpu.core_type<tc>, window_params = [{transform_indices = @transform_0, window_bounds = array<i64: 8, 4>}, {pipeline_mode = #tpu.pipeline_mode<synchronous>, transform_indices = @transform_1, window_bounds = array<i64: 4, 32>}, {pipeline_mode = #tpu.pipeline_mode<synchronous>, transform_indices = @transform_2, window_bounds = array<i64: 1, 32>}, {pipeline_mode = #tpu.pipeline_mode<synchronous>, transform_indices = @transform_3, window_bounds = array<i64: 1, 32>}, {pipeline_mode = #tpu.pipeline_mode<synchronous>, transform_indices = @transform_4, window_bounds = array<i64: 1, 1>}, {transform_indices = @transform_5, window_bounds = array<i64: 8, 1>}]} {
    %c0 = arith.constant 0 : index
    %c0_0 = arith.constant 0 : index
    %0 = vector.load %arg1[%c0, %c0_0] : memref<8x4xf32, #tpu.memory_space<vmem>>, vector<8x4xf32>
    %c0_1 = arith.constant 0 : index
    %c0_2 = arith.constant 0 : index
    %1 = vector.load %arg3[%c0_1, %c0_2] : memref<1x32xf32, #tpu.memory_space<vmem>>, vector<1x32xf32>
    %2 = vector.shape_cast %1 : vector<1x32xf32> to vector<1x32xf32>
    %3 = vector.broadcast %2 : vector<1x32xf32> to vector<8x32xf32>
    %4 = vector.extract_strided_slice %0 {offsets = [0, 0], sizes = [8, 1], strides = [1, 1]} : vector<8x4xf32> to vector<8x1xf32>
    %c0_3 = arith.constant 0 : index
    %c0_4 = arith.constant 0 : index
    %5 = vector.load %arg2[%c0_3, %c0_4] : memref<4x32xf32, #tpu.memory_space<vmem>>, vector<1x32xf32>
    %6 = vector.broadcast %4 : vector<8x1xf32> to vector<8x32xf32>
    %7 = vector.broadcast %5 : vector<1x32xf32> to vector<8x32xf32>
    %8 = arith.mulf %6, %7 : vector<8x32xf32>
    %9 = arith.addf %3, %8 : vector<8x32xf32>
    %10 = vector.extract_strided_slice %0 {offsets = [0, 1], sizes = [8, 1], strides = [1, 1]} : vector<8x4xf32> to vector<8x1xf32>
    %c1 = arith.constant 1 : index
    %c0_5 = arith.constant 0 : index
    %11 = vector.load %arg2[%c1, %c0_5] : memref<4x32xf32, #tpu.memory_space<vmem>>, vector<1x32xf32>
    %12 = vector.broadcast %10 : vector<8x1xf32> to vector<8x32xf32>
    %13 = vector.broadcast %11 : vector<1x32xf32> to vector<8x32xf32>
    %14 = arith.mulf %12, %13 : vector<8x32xf32>
    %15 = arith.addf %9, %14 : vector<8x32xf32>
    %16 = vector.extract_strided_slice %0 {offsets = [0, 2], sizes = [8, 1], strides = [1, 1]} : vector<8x4xf32> to vector<8x1xf32>
    %c2 = arith.constant 2 : index
    %c0_6 = arith.constant 0 : index
    %17 = vector.load %arg2[%c2, %c0_6] : memref<4x32xf32, #tpu.memory_space<vmem>>, vector<1x32xf32>
    %18 = vector.broadcast %16 : vector<8x1xf32> to vector<8x32xf32>
    %19 = vector.broadcast %17 : vector<1x32xf32> to vector<8x32xf32>
    %20 = arith.mulf %18, %19 : vector<8x32xf32>
    %21 = arith.addf %15, %20 : vector<8x32xf32>
    %22 = vector.extract_strided_slice %0 {offsets = [0, 3], sizes = [8, 1], strides = [1, 1]} : vector<8x4xf32> to vector<8x1xf32>
    %c3 = arith.constant 3 : index
    %c0_7 = arith.constant 0 : index
    %23 = vector.load %arg2[%c3, %c0_7] : memref<4x32xf32, #tpu.memory_space<vmem>>, vector<1x32xf32>
    %24 = vector.broadcast %22 : vector<8x1xf32> to vector<8x32xf32>
    %25 = vector.broadcast %23 : vector<1x32xf32> to vector<8x32xf32>
    %26 = arith.mulf %24, %25 : vector<8x32xf32>
    %27 = arith.addf %21, %26 : vector<8x32xf32>
    %cst = arith.constant 0.000000e+00 : f32
    %28 = vector.broadcast %cst : f32 to vector<8x32xf32>
    %29 = arith.maximumf %27, %28 : vector<8x32xf32>
    %c0_8 = arith.constant 0 : index
    %c0_9 = arith.constant 0 : index
    %30 = vector.load %arg4[%c0_8, %c0_9] : memref<1x32xf32, #tpu.memory_space<vmem>>, vector<1x32xf32>
    %31 = vector.broadcast %30 : vector<1x32xf32> to vector<8x32xf32>
    %32 = arith.mulf %29, %31 : vector<8x32xf32>
    %cst_10 = arith.constant dense<0.000000e+00> : vector<8xf32>
    %33 = vector.multi_reduction <add>, %32, %cst_10 [1] : vector<8x32xf32> to vector<8xf32>
    %34 = vector.shape_cast %33 : vector<8xf32> to vector<8x1xf32>
    %c0_11 = arith.constant 0 : index
    %c0_12 = arith.constant 0 : index
    %35 = vector.load %arg5[%c0_11, %c0_12] : memref<1x1xf32, #tpu.memory_space<vmem>>, vector<1x1xf32>
    %36 = vector.broadcast %35 : vector<1x1xf32> to vector<8x1xf32>
    %37 = arith.addf %34, %36 : vector<8x1xf32>
    %c0_13 = arith.constant 0 : index
    %c0_14 = arith.constant 0 : index
    %38 = vector.load %arg6[%c0_13, %c0_14] : memref<8x1xf32, #tpu.memory_space<vmem>>, vector<8x1xf32>
    tpu.vector_store %arg6[%c0_13, %c0_14], %37 {strides = array<i32>} : memref<8x1xf32, #tpu.memory_space<vmem>>, vector<8x1xf32>,
    return
  }
  func.func @transform_0(%arg0: i32) -> (i32, i32) {
    %c0_i32 = arith.constant 0 : i32
    %c0_i32_0 = arith.constant 0 : i32
    return %arg0, %c0_i32 : i32, i32
  }
  func.func @transform_1(%arg0: i32) -> (i32, i32) {
    %c0_i32 = arith.constant 0 : i32
    %c0_i32_0 = arith.constant 0 : i32
    %c0_i32_1 = arith.constant 0 : i32
    return %c0_i32, %c0_i32_0 : i32, i32
  }
  func.func @transform_2(%arg0: i32) -> (i32, i32) {
    %c0_i32 = arith.constant 0 : i32
    %c0_i32_0 = arith.constant 0 : i32
    %c0_i32_1 = arith.constant 0 : i32
    return %c0_i32, %c0_i32_0 : i32, i32
  }
  func.func @transform_3(%arg0: i32) -> (i32, i32) {
    %c0_i32 = arith.constant 0 : i32
    %c0_i32_0 = arith.constant 0 : i32
    %c0_i32_1 = arith.constant 0 : i32
    return %c0_i32, %c0_i32_0 : i32, i32
  }
  func.func @transform_4(%arg0: i32) -> (i32, i32) {
    %c0_i32 = arith.constant 0 : i32
    %c0_i32_0 = arith.constant 0 : i32
    %c0_i32_1 = arith.constant 0 : i32
    return %c0_i32, %c0_i32_0 : i32, i32
  }
  func.func @transform_5(%arg0: i32) -> (i32, i32) {
    %c0_i32 = arith.constant 0 : i32
    %c0_i32_0 = arith.constant 0 : i32
    return %arg0, %c0_i32 : i32, i32
  }
}

</mosaic_0001>

<bundles_post_ra>
// kernel: tpu_custom_call.1
= control target key start
LH: loop header
LB: loop body
LE: loop exit
PB: predicated region body
PF: predicated region fallthrough
CT: control target
= control target key end

     0   :  { %v118_v0 = vmov 0   ;;  %v119_v2 = vmov 2   ;;  %v120_v3 = vmov 1   ;;  %v121_v4 = vmov 3   ;;  %s179_s0 = inlined_call_operand.vmem [shape: f32[8,4], index: 0, kind: input, shape index: {}]   ;;  %s180_s4 = inlined_call_operand.<no memory space> [shape: f32[1,1], index: 4, kind: input, shape index: {}]   ;;  %s181_s1 = inlined_call_operand.vmem [shape: f32[4,32], index: 1, kind: input, shape index: {}]   ;;  %s182_s2 = inlined_call_operand.vmem [shape: f32[1,32], index: 2, kind: input, shape index: {}]   ;;  %s183_s3 = inlined_call_operand.vmem [shape: f32[1,32], index: 3, kind: input, shape index: {}]   ;;  %s184_s5 = inlined_call_operand.vmem [shape: f32[8,1], index: 5, kind: output, shape index: {}]  }
   0x1   :  { %113 = vset.pattern.permute.xlu0 %v118_v0  ;;  %v22_v1 = vld [vmem:[%s179_s0] sm:$0xff]  ;;  %115 = vset.pattern.permute.xlu1 %v119_v2  ;;  %v10_v5 = vstv %s180_s4  ;;  %vm84_vm0 = vcmask 261120   ;;  %vm96_vm1 = vcmask 7168  }
   0x2   :  { %33 = vperm.xlu0 %113, %v22_v1   ;;  %55 = vperm.xlu1 %115, %v22_v1   ;;  %11 = vst [vmem:[#allocation2] sm:$0x1] %v10_v5  ;;  %v103_v6 = vld [vmem:[%s181_s1] ss:$0 sm:$0xff]  ;;  %v104_v11 = vld [vmem:[%s181_s1 + $0x1] ss:$0 sm:$0xff] }
   0x3   :  { %v102_v10 = vld [vmem:[%s182_s2] ss:$0 sm:$0xff]  ;;  %v105_v12 = vld [vmem:[%s181_s1 + $0x2] ss:$0 sm:$0xff]  ;;  %v106_v14 = vld [vmem:[%s181_s1 + $0x3] ss:$0 sm:$0xff] }
   0x4   :  { %v107_v23 = vld [vmem:[%s183_s3] ss:$0 sm:$0xff] }
   0x6   :  { %114 = vset.pattern.permute.xlu0 %v120_v3  ;;  %116 = vset.pattern.permute.xlu1 %v121_v4 }
   0x7   :  { %44 = vperm.xlu0 %114, %v22_v1   ;;  %66 = vperm.xlu1 %116, %v22_v1  }
   0x9   :  { %v108_v27 = vld [vmem:[#allocation2] ss:$0 sm:$0xff] }
   0xb   :  { %117 = vset.pattern.permute.xlu0 %v121_v4 }
  0x81   :  { %v34_v7 = vpop.permute.xlu0 %33  ;;  %v56_v8 = vpop.permute.xlu1 %55 }
  0x82   :  { %v40_v9 = vmul.f32 %v103_v6, %v34_v7  ;;  %v62_v18 = vmul.f32 %v105_v12, %v56_v8 }
  0x84   :  { %v41_v16 = vadd.f32 %v102_v10, %v40_v9 }
  0x86   :  { %v45_v13 = vpop.permute.xlu0 %44  ;;  %v67_v15 = vpop.permute.xlu1 %66 }
  0x87   :  { %v51_v17 = vmul.f32 %v104_v11, %v45_v13  ;;  %v73_v20 = vmul.f32 %v106_v14, %v67_v15 }
  0x89   :  { %v52_v19 = vadd.f32 %v51_v17, %v41_v16 }
  0x8b   :  { %v63_v21 = vadd.f32 %v62_v18, %v52_v19 }
  0x8d   :  { %v74_v22 = vadd.f32 %v73_v20, %v63_v21 }
  0x8f   :  { %v75_v24 = vmax.f32 %v74_v22, 0.0 }
  0x91   :  { %v83_v25 = vmul.f32 %v107_v23, %v75_v24 }
  0x93   :  { %v85_v26 = vsel %vm84_vm0, %v83_v25, 0.0 }
  0x94   :  { %86 = vadd.xlane.f32.xlu1 %v85_v26 }
 0x121   :  { %v87_v28 = vpop.xlane.xlu1 %86 }
 0x122   :  { %v95_v29 = vadd.f32 %v108_v27, %v87_v28 }
 0x124   :  { %97 = vst.msk [vmem:[%s184_s5] sm:$0xff] %vm96_vm1, %v95_v29 }

</bundles_post_ra>
